<compile_context>
chip_gen: v6e
topology: v6e:2x2x1
jax: 0.10.0
libtpu: 0.0.40
codegen_flags: <defaults>
</compile_context>

<pallas_src>
import functools
import math

import jax
import jax.numpy as jnp
from jax import lax
from jax.experimental import pallas as pl
from jax.experimental.pallas import tpu as pltpu

_F32 = jnp.float32
_BF16 = jnp.bfloat16
_LN_EPS = 1e-5
_MIB = 1024 * 1024


# ---------------------------------------------------------------------------
# In-kernel helpers
# ---------------------------------------------------------------------------
def _layernorm(v, w, b):
    mu = jnp.mean(v, axis=-1, keepdims=True)
    var = jnp.mean(jnp.square(v - mu), axis=-1, keepdims=True)
    return (v - mu) * lax.rsqrt(var + _LN_EPS) * w + b


def _mm(a, w_ref):
    """bf16 MXU matmul (f32 accumulation) against a resident weight ref."""
    return jnp.dot(a.astype(_BF16), w_ref[...], preferred_element_type=_F32)


def _attention_heads(q, k_bf, v_bf, num_heads):
    """Multi-head attention for one query tile.

    q:    (TQ, D) f32, scale 1/sqrt(Dh) already folded into wq/bq.
    k_bf: (S, D)  bf16
    v_bf: (S, D)  bf16
    Returns (TQ, D) f32 with heads folded back into lanes (pre out-proj).
    """
    _, D = q.shape
    Dh = D // num_heads
    q_bf = q.astype(_BF16)
    ctx = []
    for h in range(num_heads):
        sl = slice(h * Dh, (h + 1) * Dh)
        s = jnp.einsum("qd,kd->qk", q_bf[:, sl], k_bf[:, sl],
                       preferred_element_type=_F32)                 # (TQ, S)
        s = s - jnp.max(s, axis=-1, keepdims=True)
        p = jnp.exp(s)
        p = p * pl.reciprocal(jnp.sum(p, axis=-1, keepdims=True), approx=True)
        ctx.append(jnp.dot(p.astype(_BF16), v_bf[:, sl],
                           preferred_element_type=_F32))            # (TQ, Dh)
    # Lane-dim concat -> single dense (TQ, D) slab, so out_proj is one
    # [TQ,D]x[D,D] MXU matmul (no (H,TQ,D) f32 intermediate, no axis-0 reduce).
    return jnp.concatenate(ctx, axis=-1)


def _block_tail(x, xn, k_bf, v_bf,
                wq_ref, bq_ref, wo_ref, bo_ref,
                ln2w_ref, ln2b_ref, wfc_ref, bfc_ref, wproj_ref, bproj_ref,
                num_heads):
    """Attention + out_proj + residual + MLP, given LN1(x) and bf16 K/V."""
    q = _mm(xn, wq_ref) + bq_ref[...]                 # (TQ, D), pre-scaled
    o = _attention_heads(q, k_bf, v_bf, num_heads)
    x = x + _mm(o, wo_ref) + bo_ref[...]              # residual 1
    xn2 = _layernorm(x, ln2w_ref[...], ln2b_ref[...])
    h1 = _mm(xn2, wfc_ref) + bfc_ref[...]             # (TQ, 4D)
    h1 = h1 * jax.nn.sigmoid(1.702 * h1)              # QuickGELU
    return x + _mm(h1, wproj_ref) + bproj_ref[...]    # residual 2


# ---------------------------------------------------------------------------
# Fused ResidualAttentionBlock kernels
# ---------------------------------------------------------------------------
def _resblock_full_kernel(
    x_ref,                                   # (1, S, D) activations (whole seq)
    ln1w_ref, ln1b_ref,
    wq_ref, wk_ref, wv_ref, bq_ref, bk_ref, bv_ref,
    wo_ref, bo_ref,
    ln2w_ref, ln2b_ref,
    wfc_ref, bfc_ref, wproj_ref, bproj_ref,
    out_ref,                                 # (1, S, D)
    *, num_heads):
    """Whole-sequence path (seq tile == S): x passed once, LN1 computed once."""
    x = x_ref[0].astype(_F32)                                     # (S, D)
    xn = _layernorm(x, ln1w_ref[...], ln1b_ref[...])
    k = _mm(xn, wk_ref) + bk_ref[...]
    v = _mm(xn, wv_ref) + bv_ref[...]
    y = _block_tail(x, xn, k.astype(_BF16), v.astype(_BF16),
                    wq_ref, bq_ref, wo_ref, bo_ref,
                    ln2w_ref, ln2b_ref, wfc_ref, bfc_ref, wproj_ref, bproj_ref,
                    num_heads)
    out_ref[0] = y.astype(out_ref.dtype)


def _resblock_tiled_kernel(
    x_ref,                                   # (1, TS, D) query/residual tile
    xfull_ref,                               # (1, S, D)  full sequence (K/V src)
    ln1w_ref, ln1b_ref,
    wq_ref, wk_ref, wv_ref, bq_ref, bk_ref, bv_ref,
    wo_ref, bo_ref,
    ln2w_ref, ln2b_ref,
    wfc_ref, bfc_ref, wproj_ref, bproj_ref,
    out_ref,                                 # (1, TS, D)
    k_cache, v_cache,                        # VMEM scratch (S, D) bf16
    *, num_heads):
    """Tiled path (seq tile < S): K/V computed once per batch element into
    persistent bf16 VMEM scratch (seq grid axis is 'arbitrary')."""
    @pl.when(pl.program_id(1) == 0)
    def _():
        xkv = xfull_ref[0].astype(_F32)                           # (S, D)
        xkn = _layernorm(xkv, ln1w_ref[...], ln1b_ref[...])
        k_cache[...] = (_mm(xkn, wk_ref) + bk_ref[...]).astype(_BF16)
        v_cache[...] = (_mm(xkn, wv_ref) + bv_ref[...]).astype(_BF16)

    x = x_ref[0].astype(_F32)                                     # (TS, D)
    xn = _layernorm(x, ln1w_ref[...], ln1b_ref[...])
    y = _block_tail(x, xn, k_cache[...], v_cache[...],
                    wq_ref, bq_ref, wo_ref, bo_ref,
                    ln2w_ref, ln2b_ref, wfc_ref, bfc_ref, wproj_ref, bproj_ref,
                    num_heads)
    out_ref[0] = y.astype(out_ref.dtype)


# ---------------------------------------------------------------------------
# Host-side helpers: weight prep, VMEM budgeting, tile selection, specs
# ---------------------------------------------------------------------------
def prep_layer_params(p, num_heads):
    """One-time conversion of PyTorch-layout params to kernel layout:
    split + transpose qkv, fold 1/sqrt(Dh) into wq/bq, transpose out/fc/proj,
    cast matmul weights to bf16 (biases / LN params stay f32)."""
    D = p["ln1_w"].shape[-1]
    Dh = D // num_heads
    scale = 1.0 / math.sqrt(Dh)
    w_in = p["in_proj_w"]                       # (3D, D);  y = x @ W.T + b
    b_in = p["in_proj_b"]
    f32 = jnp.float32
    return dict(
        ln1_w=p["ln1_w"].reshape(1, D).astype(f32),
        ln1_b=p["ln1_b"].reshape(1, D).astype(f32),
        wq=(jnp.transpose(w_in[0:D]) * scale).astype(_BF16),       # (D, D)
        wk=jnp.transpose(w_in[D:2 * D]).astype(_BF16),
        wv=jnp.transpose(w_in[2 * D:3 * D]).astype(_BF16),
        bq=(b_in[0:D] * scale).reshape(1, D).astype(f32),
        bk=b_in[D:2 * D].reshape(1, D).astype(f32),
        bv=b_in[2 * D:3 * D].reshape(1, D).astype(f32),
        wo=jnp.transpose(p["out_proj_w"]).astype(_BF16),           # (D, D)
        bo=p["out_proj_b"].reshape(1, D).astype(f32),
        ln2_w=p["ln2_w"].reshape(1, D).astype(f32),
        ln2_b=p["ln2_b"].reshape(1, D).astype(f32),
        wfc=jnp.transpose(p["fc_w"]).astype(_BF16),                # (D, 4D)
        bfc=p["fc_b"].reshape(1, 4 * D).astype(f32),
        wproj=jnp.transpose(p["proj_w"]).astype(_BF16),            # (4D, D)
        bproj=p["proj_b"].reshape(1, D).astype(f32),
    )


def _vmem_budget_bytes():
    """Generation-aware VMEM request: ~10 MiB compiler headroom on 64 MiB/TC
    parts (v7x), ~16 MiB headroom capped at 112 MiB on 128 MiB parts."""
    try:
        cap = int(pltpu.get_tpu_info().vmem_capacity_bytes)
    except Exception:
        cap = 64 * _MIB
    if cap <= 64 * _MIB:
        return max(cap - 10 * _MIB, 32 * _MIB)
    return min(cap - 16 * _MIB, 112 * _MIB)


def _estimate_vmem_bytes(ts, S, D):
    """Conservative per-step VMEM estimate for a (ts, S, D) block kernel."""
    bf, f32 = 2, 4
    full = ts >= S
    weights = 12 * D * D * bf + 16 * D * f32          # bf16 mats (1-buffered) + vecs
    io = 2 * 2 * ts * D * bf                          # in/out tiles, double-buffered
    kv = 0 if full else (2 * S * D * bf               # full-seq input block
                         + 2 * S * D * bf)            # K/V bf16 cache scratch
    interm = f32 * (3 * ts * D                        # x, xn, q
                    + (2 * S * D if full else S * D)  # k/v (full) or KV-proj temps
                    + 3 * ts * S                      # score/prob working set
                    + ts * D                          # attention context
                    + 2 * ts * 4 * D)                 # MLP hidden (pre/post GELU)
    return weights + io + kv + interm


def _pick_seq_tile(S, D, budget):
    """Largest seq tile fitting the VMEM budget; prefers whole-sequence, then
    multiples of 256 (MXU M depth on v6e/v7x), then 128."""
    if _estimate_vmem_bytes(S, S, D) <= budget:
        return S
    cands = [t for t in (2048, 1024, 512, 256, 128) if t < S and S % t == 0]
    for t in cands:
        if _estimate_vmem_bytes(t, S, D) <= budget:
            return t
    return cands[-1] if cands else S


def _resident_spec(shape):
    """BlockSpec for a weight that stays resident across the whole grid:
    constant index_map, single-buffered (multi-buffering buys nothing)."""
    nd = len(shape)
    index_map = lambda *_: (0,) * nd
    try:
        return pl.BlockSpec(shape, index_map, pipeline_mode=pl.Buffered(1))
    except Exception:  # older jax without pipeline_mode / Buffered(1)
        return pl.BlockSpec(shape, index_map)


# ---------------------------------------------------------------------------
# pallas_call wrappers
# ---------------------------------------------------------------------------
def residual_attention_block(x_bsd, kp, num_heads, seq_tile=None):
    """One fused pre-LN MHA + QuickGELU MLP block. x_bsd: (B, S, D)."""
    B, S, D = x_bsd.shape
    budget = _vmem_budget_bytes()
    TS = _pick_seq_tile(S, D, budget) if seq_tile is None else min(int(seq_tile), S)
    full = TS >= S
    if not full:
        assert S % TS == 0, (S, TS)

    weights = [
        kp["ln1_w"], kp["ln1_b"],
        kp["wq"], kp["wk"], kp["wv"], kp["bq"], kp["bk"], kp["bv"],
        kp["wo"], kp["bo"],
        kp["ln2_w"], kp["ln2_b"],
        kp["wfc"], kp["bfc"], kp["wproj"], kp["bproj"],
    ]
    weight_specs = [_resident_spec(w.shape) for w in weights]
    weight_bytes = int(sum(w.size * w.dtype.itemsize for w in weights))
    act_bytes = x_bsd.dtype.itemsize

    if full:
        grid = (B,)
        in_specs = [pl.BlockSpec((1, S, D), lambda b: (b, 0, 0))] + weight_specs
        out_specs = pl.BlockSpec((1, S, D), lambda b: (b, 0, 0))
        scratch_shapes = []
        kernel = functools.partial(_resblock_full_kernel, num_heads=num_heads)
        dims = ("parallel",)
        operands = (x_bsd, *weights)
        io_bytes = 2 * B * S * D * act_bytes
    else:
        grid = (B, S // TS)
        in_specs = ([pl.BlockSpec((1, TS, D), lambda b, s: (b, s, 0)),
                     pl.BlockSpec((1, S, D), lambda b, s: (b, 0, 0))]
                    + weight_specs)
        out_specs = pl.BlockSpec((1, TS, D), lambda b, s: (b, s, 0))
        scratch_shapes = [pltpu.VMEM((S, D), _BF16),    # K cache (per batch elem)
                          pltpu.VMEM((S, D), _BF16)]    # V cache
        kernel = functools.partial(_resblock_tiled_kernel, num_heads=num_heads)
        # seq axis carries the K/V cache -> must run in order ("arbitrary").
        dims = ("parallel", "arbitrary")
        operands = (x_bsd, x_bsd, *weights)
        io_bytes = 3 * B * S * D * act_bytes

    cost = pl.CostEstimate(
        flops=24 * B * S * D * D + 4 * B * S * S * D,
        transcendentals=B * S * (num_heads * S + 4 * D),
        bytes_accessed=weight_bytes + io_bytes,
    )

    return pl.pallas_call(
        kernel,
        out_shape=jax.ShapeDtypeStruct((B, S, D), x_bsd.dtype),
        grid_spec=pltpu.PrefetchScalarGridSpec(
            num_scalar_prefetch=0,
            grid=grid,
            in_specs=in_specs,
            out_specs=out_specs,
            scratch_shapes=scratch_shapes,
        ),
        compiler_params=pltpu.CompilerParams(
            dimension_semantics=dims,
            vmem_limit_bytes=int(budget),
        ),
        cost_estimate=cost,
    )(*operands)


@functools.partial(jax.jit, static_argnames=("num_heads", "seq_tile"))
def transformer_forward(x_sbd, kernel_params, num_heads, seq_tile=None):
    """Mirrors Transformer.forward: x is (S, B, D); returns a list of (B, S, D)
    features (each == layer_output.permute(1, 0, 2) in the PyTorch module).
    Activations stream layer-to-layer in bf16; features are returned as f32."""
    x = jnp.transpose(x_sbd, (1, 0, 2)).astype(_BF16)          # (B, S, D)
    image_features = []
    for kp in kernel_params:
        x = residual_attention_block(x, kp, num_heads, seq_tile)
        image_features.append(x.astype(jnp.float32))
    return image_features


# ---------------------------------------------------------------------------
# Deterministic synthetic parameters (PyTorch-native layout) + f32 reference.
# ---------------------------------------------------------------------------
def init_params(key, width, layers):
    D = width
    params = []
    for i in range(layers):
        k = jax.random.fold_in(key, i)
        ks = jax.random.split(k, 6)
        params.append(dict(
            ln1_w=jnp.ones((D,), jnp.float32),
            ln1_b=jnp.zeros((D,), jnp.float32),
            in_proj_w=0.02 * jax.random.normal(ks[0], (3 * D, D), jnp.float32),
            in_proj_b=0.01 * jax.random.normal(ks[1], (3 * D,), jnp.float32),
            out_proj_w=0.02 * jax.random.normal(ks[2], (D, D), jnp.float32),
            out_proj_b=jnp.zeros((D,), jnp.float32),
            ln2_w=jnp.ones((D,), jnp.float32),
            ln2_b=jnp.zeros((D,), jnp.float32),
            fc_w=0.02 * jax.random.normal(ks[3], (4 * D, D), jnp.float32),
            fc_b=0.01 * jax.random.normal(ks[4], (4 * D,), jnp.float32),
            proj_w=0.02 * jax.random.normal(ks[5], (D, 4 * D), jnp.float32),
            proj_b=jnp.zeros((D,), jnp.float32),
        ))
    return params


def _reference_block(x_bsd, p, num_heads):
    """Pure-JAX f32 reference of ResidualAttentionBlock.forward_impl."""
    B, S, D = x_bsd.shape
    H = num_heads
    Dh = D // H

    def ln(v, w, b):
        mu = v.mean(-1, keepdims=True)
        var = ((v - mu) ** 2).mean(-1, keepdims=True)
        return (v - mu) / jnp.sqrt(var + 1e-5) * w + b

    xn = ln(x_bsd, p["ln1_w"], p["ln1_b"])
    qkv = xn @ p["in_proj_w"].T + p["in_proj_b"]
    q, k, v = qkv[..., :D], qkv[..., D:2 * D], qkv[..., 2 * D:]
    q = jnp.transpose(q.reshape(B, S, H, Dh), (0, 2, 1, 3)) / math.sqrt(Dh)
    k = jnp.transpose(k.reshape(B, S, H, Dh), (0, 2, 1, 3))
    v = jnp.transpose(v.reshape(B, S, H, Dh), (0, 2, 1, 3))
    s = jnp.einsum("bhqd,bhkd->bhqk", q, k)
    pr = jax.nn.softmax(s, axis=-1)
    o = jnp.einsum("bhqk,bhkd->bhqd", pr, v)
    o = jnp.transpose(o, (0, 2, 1, 3)).reshape(B, S, D)
    x = x_bsd + o @ p["out_proj_w"].T + p["out_proj_b"]
    xn2 = ln(x, p["ln2_w"], p["ln2_b"])
    h = xn2 @ p["fc_w"].T + p["fc_b"]
    h = h * jax.nn.sigmoid(1.702 * h)
    return x + h @ p["proj_w"].T + p["proj_b"]


if __name__ == "__main__":
    # Small shapes consistent with the module: width=32, heads=4, layers=2,
    # sequence=8, batch=2.  Input uses the PyTorch (seq, batch, width) layout.
    S, B, D, H, L = 8, 2, 32, 4, 2
    key = jax.random.PRNGKey(0)
    kx, kp, kx2 = jax.random.split(key, 3)
    x = jax.random.normal(kx, (S, B, D), jnp.float32)
    params = init_params(kp, D, L)

    # One-time weight layout conversion (transpose / scale-fold / bf16 cast).
    kernel_params = [prep_layer_params(p, H) for p in params]

    # --- whole-sequence path (the common vision-encoder case) ---------------
    feats = transformer_forward(x, kernel_params, num_heads=H)
    feats = [jax.block_until_ready(f) for f in feats]
    assert len(feats) == L and all(f.shape == (B, S, D) for f in feats)

    xb = jnp.transpose(x, (1, 0, 2))
    for li, p in enumerate(params):
        xb = _reference_block(xb, p, H)
        err = float(jnp.max(jnp.abs(feats[li] - xb)))
        assert jnp.allclose(feats[li], xb, rtol=3e-2, atol=3e-2), (li, err)

    # --- tiled path (seq tile < S) with the persistent K/V cache ------------
    S2, TS2 = 128, 64
    x2 = jax.random.normal(kx2, (S2, B, D), jnp.float32)
    feats2 = transformer_forward(x2, kernel_params[:1], num_heads=H, seq_tile=TS2)
    feats2 = [jax.block_until_ready(f) for f in feats2]
    ref2 = _reference_block(jnp.transpose(x2, (1, 0, 2)), params[0], H)
    err2 = float(jnp.max(jnp.abs(feats2[0] - ref2)))
    assert jnp.allclose(feats2[0], ref2, rtol=3e-2, atol=3e-2), err2

    print("KERNEL_OK")
</pallas_src>

<mosaic_0001>
module attributes {stable_mosaic.version = 11 : i64} {
  func.func @_resblock_full_kernel(%arg0: i32, %arg1: memref<1x8x32xbf16, #tpu.memory_space<vmem>>, %arg2: memref<1x32xf32, #tpu.memory_space<vmem>>, %arg3: memref<1x32xf32, #tpu.memory_space<vmem>>, %arg4: memref<32x32xbf16, #tpu.memory_space<vmem>>, %arg5: memref<32x32xbf16, #tpu.memory_space<vmem>>, %arg6: memref<32x32xbf16, #tpu.memory_space<vmem>>, %arg7: memref<1x32xf32, #tpu.memory_space<vmem>>, %arg8: memref<1x32xf32, #tpu.memory_space<vmem>>, %arg9: memref<1x32xf32, #tpu.memory_space<vmem>>, %arg10: memref<32x32xbf16, #tpu.memory_space<vmem>>, %arg11: memref<1x32xf32, #tpu.memory_space<vmem>>, %arg12: memref<1x32xf32, #tpu.memory_space<vmem>>, %arg13: memref<1x32xf32, #tpu.memory_space<vmem>>, %arg14: memref<32x128xbf16, #tpu.memory_space<vmem>>, %arg15: memref<1x128xf32, #tpu.memory_space<vmem>>, %arg16: memref<128x32xbf16, #tpu.memory_space<vmem>>, %arg17: memref<1x32xf32, #tpu.memory_space<vmem>>, %arg18: memref<1x8x32xbf16, #tpu.memory_space<vmem>>) attributes {dimension_semantics = [#tpu.dimension_semantics<parallel>], iteration_bounds = array<i64: 2>, scalar_prefetch = 0 : i64, scratch_operands = 0 : i64, tpu.core_type = #tpu.core_type<tc>, window_params = [{transform_indices = @transform_0, window_bounds = array<i64: 1, 8, 32>}, {pipeline_mode = #tpu.pipeline_mode<synchronous>, transform_indices = @transform_1, window_bounds = array<i64: 1, 32>}, {pipeline_mode = #tpu.pipeline_mode<synchronous>, transform_indices = @transform_2, window_bounds = array<i64: 1, 32>}, {pipeline_mode = #tpu.pipeline_mode<synchronous>, transform_indices = @transform_3, window_bounds = array<i64: 32, 32>}, {pipeline_mode = #tpu.pipeline_mode<synchronous>, transform_indices = @transform_4, window_bounds = array<i64: 32, 32>}, {pipeline_mode = #tpu.pipeline_mode<synchronous>, transform_indices = @transform_5, window_bounds = array<i64: 32, 32>}, {pipeline_mode = #tpu.pipeline_mode<synchronous>, transform_indices = @transform_6, window_bounds = array<i64: 1, 32>}, {pipeline_mode = #tpu.pipeline_mode<synchronous>, transform_indices = @transform_7, window_bounds = array<i64: 1, 32>}, {pipeline_mode = #tpu.pipeline_mode<synchronous>, transform_indices = @transform_8, window_bounds = array<i64: 1, 32>}, {pipeline_mode = #tpu.pipeline_mode<synchronous>, transform_indices = @transform_9, window_bounds = array<i64: 32, 32>}, {pipeline_mode = #tpu.pipeline_mode<synchronous>, transform_indices = @transform_10, window_bounds = array<i64: 1, 32>}, {pipeline_mode = #tpu.pipeline_mode<synchronous>, transform_indices = @transform_11, window_bounds = array<i64: 1, 32>}, {pipeline_mode = #tpu.pipeline_mode<synchronous>, transform_indices = @transform_12, window_bounds = array<i64: 1, 32>}, {pipeline_mode = #tpu.pipeline_mode<synchronous>, transform_indices = @transform_13, window_bounds = array<i64: 32, 128>}, {pipeline_mode = #tpu.pipeline_mode<synchronous>, transform_indices = @transform_14, window_bounds = array<i64: 1, 128>}, {pipeline_mode = #tpu.pipeline_mode<synchronous>, transform_indices = @transform_15, window_bounds = array<i64: 128, 32>}, {pipeline_mode = #tpu.pipeline_mode<synchronous>, transform_indices = @transform_16, window_bounds = array<i64: 1, 32>}, {transform_indices = @transform_17, window_bounds = array<i64: 1, 8, 32>}]} {
    %c0 = arith.constant 0 : index
    %c0_0 = arith.constant 0 : index
    %c0_1 = arith.constant 0 : index
    %0 = vector.load %arg1[%c0, %c0_0, %c0_1] : memref<1x8x32xbf16, #tpu.memory_space<vmem>>, vector<1x8x32xbf16>
    %1 = vector.shape_cast %0 : vector<1x8x32xbf16> to vector<8x32xbf16>
    %2 = arith.extf %1 : vector<8x32xbf16> to vector<8x32xf32>
    %c0_2 = arith.constant 0 : index
    %c0_3 = arith.constant 0 : index
    %3 = vector.load %arg2[%c0_2, %c0_3] : memref<1x32xf32, #tpu.memory_space<vmem>>, vector<1x32xf32>
    %c0_4 = arith.constant 0 : index
    %c0_5 = arith.constant 0 : index
    %4 = vector.load %arg3[%c0_4, %c0_5] : memref<1x32xf32, #tpu.memory_space<vmem>>, vector<1x32xf32>
    %cst = arith.constant dense<0.000000e+00> : vector<8xf32>
    %5 = vector.multi_reduction <add>, %2, %cst [1] : vector<8x32xf32> to vector<8xf32>
    %6 = vector.shape_cast %5 : vector<8xf32> to vector<8x1xf32>
    %cst_6 = arith.constant 3.200000e+01 : f32
    %7 = vector.broadcast %cst_6 : f32 to vector<8x1xf32>
    %8 = arith.divf %6, %7 : vector<8x1xf32>
    %9 = vector.broadcast %8 : vector<8x1xf32> to vector<8x32xf32>
    %10 = arith.subf %2, %9 : vector<8x32xf32>
    %11 = arith.mulf %10, %10 : vector<8x32xf32>
    %cst_7 = arith.constant dense<0.000000e+00> : vector<8xf32>
    %12 = vector.multi_reduction <add>, %11, %cst_7 [1] : vector<8x32xf32> to vector<8xf32>
    %13 = vector.shape_cast %12 : vector<8xf32> to vector<8x1xf32>
    %cst_8 = arith.constant 3.200000e+01 : f32
    %14 = vector.broadcast %cst_8 : f32 to vector<8x1xf32>
    %15 = arith.divf %13, %14 : vector<8x1xf32>
    %16 = vector.broadcast %8 : vector<8x1xf32> to vector<8x32xf32>
    %17 = arith.subf %2, %16 : vector<8x32xf32>
    %cst_9 = arith.constant 9.99999974E-6 : f32
    %18 = vector.broadcast %cst_9 : f32 to vector<8x1xf32>
    %19 = arith.addf %15, %18 : vector<8x1xf32>
    %20 = math.rsqrt %19 : vector<8x1xf32>
    %21 = vector.broadcast %20 : vector<8x1xf32> to vector<8x32xf32>
    %22 = arith.mulf %17, %21 : vector<8x32xf32>
    %23 = vector.broadcast %3 : vector<1x32xf32> to vector<8x32xf32>
    %24 = arith.mulf %22, %23 : vector<8x32xf32>
    %25 = vector.broadcast %4 : vector<1x32xf32> to vector<8x32xf32>
    %26 = arith.addf %24, %25 : vector<8x32xf32>
    %27 = arith.truncf %26 : vector<8x32xf32> to vector<8x32xbf16>
    %c0_10 = arith.constant 0 : index
    %c0_11 = arith.constant 0 : index
    %28 = vector.load %arg5[%c0_10, %c0_11] : memref<32x32xbf16, #tpu.memory_space<vmem>>, vector<32x32xbf16>
    %cst_12 = arith.constant dense<0.000000e+00> : vector<8x32xf32>
    %29 = tpu.matmul %27, %28, %cst_12 {dimension_numbers = #tpu.dot_dimension_numbers<[1], [0], [0], [1], [0, 0, 1, 1], [], []>} : vector<8x32xbf16>, vector<32x32xbf16>, vector<8x32xf32> -> vector<8x32xf32>
    %c0_13 = arith.constant 0 : index
    %c0_14 = arith.constant 0 : index
    %30 = vector.load %arg8[%c0_13, %c0_14] : memref<1x32xf32, #tpu.memory_space<vmem>>, vector<1x32xf32>
    %31 = vector.broadcast %30 : vector<1x32xf32> to vector<8x32xf32>
    %32 = arith.addf %29, %31 : vector<8x32xf32>
    %33 = arith.truncf %26 : vector<8x32xf32> to vector<8x32xbf16>
    %c0_15 = arith.constant 0 : index
    %c0_16 = arith.constant 0 : index
    %34 = vector.load %arg6[%c0_15, %c0_16] : memref<32x32xbf16, #tpu.memory_space<vmem>>, vector<32x32xbf16>
    %cst_17 = arith.constant dense<0.000000e+00> : vector<8x32xf32>
    %35 = tpu.matmul %33, %34, %cst_17 {dimension_numbers = #tpu.dot_dimension_numbers<[1], [0], [0], [1], [0, 0, 1, 1], [], []>} : vector<8x32xbf16>, vector<32x32xbf16>, vector<8x32xf32> -> vector<8x32xf32>
    %c0_18 = arith.constant 0 : index
    %c0_19 = arith.constant 0 : index
    %36 = vector.load %arg9[%c0_18, %c0_19] : memref<1x32xf32, #tpu.memory_space<vmem>>, vector<1x32xf32>
    %37 = vector.broadcast %36 : vector<1x32xf32> to vector<8x32xf32>
    %38 = arith.addf %35, %37 : vector<8x32xf32>
    %39 = arith.truncf %32 : vector<8x32xf32> to vector<8x32xbf16>
    %40 = arith.truncf %38 : vector<8x32xf32> to vector<8x32xbf16>
    %41 = arith.truncf %26 : vector<8x32xf32> to vector<8x32xbf16>
    %c0_20 = arith.constant 0 : index
    %c0_21 = arith.constant 0 : index
    %42 = vector.load %arg4[%c0_20, %c0_21] : memref<32x32xbf16, #tpu.memory_space<vmem>>, vector<32x32xbf16>
    %cst_22 = arith.constant dense<0.000000e+00> : vector<8x32xf32>
    %43 = tpu.matmul %41, %42, %cst_22 {dimension_numbers = #tpu.dot_dimension_numbers<[1], [0], [0], [1], [0, 0, 1, 1], [], []>} : vector<8x32xbf16>, vector<32x32xbf16>, vector<8x32xf32> -> vector<8x32xf32>
    %c0_23 = arith.constant 0 : index
    %c0_24 = arith.constant 0 : index
    %44 = vector.load %arg7[%c0_23, %c0_24] : memref<1x32xf32, #tpu.memory_space<vmem>>, vector<1x32xf32>
    %45 = vector.broadcast %44 : vector<1x32xf32> to vector<8x32xf32>
    %46 = arith.addf %43, %45 : vector<8x32xf32>
    %47 = arith.truncf %46 : vector<8x32xf32> to vector<8x32xbf16>
    %48 = vector.extract_strided_slice %47 {offsets = [0, 0], sizes = [8, 8], strides = [1, 1]} : vector<8x32xbf16> to vector<8x8xbf16>
    %49 = vector.extract_strided_slice %39 {offsets = [0, 0], sizes = [8, 8], strides = [1, 1]} : vector<8x32xbf16> to vector<8x8xbf16>
    "tpu.trace_start"() <{level = 10 : i32, message = "qd,kd->qk"}> : () -> ()
    %cst_25 = arith.constant dense<0.000000e+00> : vector<8x8xf32>
    %50 = tpu.matmul %48, %49, %cst_25 {dimension_numbers = #tpu.dot_dimension_numbers<[1], [1], [0], [0], [0, 0, 1, 0], [], []>} : vector<8x8xbf16>, vector<8x8xbf16>, vector<8x8xf32> -> vector<8x8xf32>
    "tpu.trace_stop"() : () -> ()
    %cst_26 = arith.constant dense<0xFF800000> : vector<8xf32>
    %51 = vector.multi_reduction <maximumf>, %50, %cst_26 [1] : vector<8x8xf32> to vector<8xf32>
    %52 = vector.shape_cast %51 : vector<8xf32> to vector<8x1xf32>
    %53 = vector.broadcast %52 : vector<8x1xf32> to vector<8x8xf32>
    %54 = arith.subf %50, %53 : vector<8x8xf32>
    %55 = math.exp %54 : vector<8x8xf32>
    %cst_27 = arith.constant dense<0.000000e+00> : vector<8xf32>
    %56 = vector.multi_reduction <add>, %55, %cst_27 [1] : vector<8x8xf32> to vector<8xf32>
    %57 = vector.shape_cast %56 : vector<8xf32> to vector<8x1xf32>
    %58 = tpu.reciprocal %57 {approx = true} : vector<8x1xf32> -> vector<8x1xf32>
    %59 = vector.broadcast %58 : vector<8x1xf32> to vector<8x8xf32>
    %60 = arith.mulf %55, %59 : vector<8x8xf32>
    %61 = arith.truncf %60 : vector<8x8xf32> to vector<8x8xbf16>
    %62 = vector.extract_strided_slice %40 {offsets = [0, 0], sizes = [8, 8], strides = [1, 1]} : vector<8x32xbf16> to vector<8x8xbf16>
    %cst_28 = arith.constant dense<0.000000e+00> : vector<8x8xf32>
    %63 = tpu.matmul %61, %62, %cst_28 {dimension_numbers = #tpu.dot_dimension_numbers<[1], [0], [0], [1], [0, 0, 1, 1], [], []>} : vector<8x8xbf16>, vector<8x8xbf16>, vector<8x8xf32> -> vector<8x8xf32>
    %64 = vector.extract_strided_slice %47 {offsets = [0, 8], sizes = [8, 8], strides = [1, 1]} : vector<8x32xbf16> to vector<8x8xbf16>
    %65 = vector.extract_strided_slice %39 {offsets = [0, 8], sizes = [8, 8], strides = [1, 1]} : vector<8x32xbf16> to vector<8x8xbf16>
    "tpu.trace_start"() <{level = 10 : i32, message = "qd,kd->qk"}> : () -> ()
    %cst_29 = arith.constant dense<0.000000e+00> : vector<8x8xf32>
    %66 = tpu.matmul %64, %65, %cst_29 {dimension_numbers = #tpu.dot_dimension_numbers<[1], [1], [0], [0], [0, 0, 1, 0], [], []>} : vector<8x8xbf16>, vector<8x8xbf16>, vector<8x8xf32> -> vector<8x8xf32>
    "tpu.trace_stop"() : () -> ()
    %cst_30 = arith.constant dense<0xFF800000> : vector<8xf32>
    %67 = vector.multi_reduction <maximumf>, %66, %cst_30 [1] : vector<8x8xf32> to vector<8xf32>
    %68 = vector.shape_cast %67 : vector<8xf32> to vector<8x1xf32>
    %69 = vector.broadcast %68 : vector<8x1xf32> to vector<8x8xf32>
    %70 = arith.subf %66, %69 : vector<8x8xf32>
    %71 = math.exp %70 : vector<8x8xf32>
    %cst_31 = arith.constant dense<0.000000e+00> : vector<8xf32>
    %72 = vector.multi_reduction <add>, %71, %cst_31 [1] : vector<8x8xf32> to vector<8xf32>
    %73 = vector.shape_cast %72 : vector<8xf32> to vector<8x1xf32>
    %74 = tpu.reciprocal %73 {approx = true} : vector<8x1xf32> -> vector<8x1xf32>
    %75 = vector.broadcast %74 : vector<8x1xf32> to vector<8x8xf32>
    %76 = arith.mulf %71, %75 : vector<8x8xf32>
    %77 = arith.truncf %76 : vector<8x8xf32> to vector<8x8xbf16>
    %78 = vector.extract_strided_slice %40 {offsets = [0, 8], sizes = [8, 8], strides = [1, 1]} : vector<8x32xbf16> to vector<8x8xbf16>
    %cst_32 = arith.constant dense<0.000000e+00> : vector<8x8xf32>
    %79 = tpu.matmul %77, %78, %cst_32 {dimension_numbers = #tpu.dot_dimension_numbers<[1], [0], [0], [1], [0, 0, 1, 1], [], []>} : vector<8x8xbf16>, vector<8x8xbf16>, vector<8x8xf32> -> vector<8x8xf32>
    %80 = vector.extract_strided_slice %47 {offsets = [0, 16], sizes = [8, 8], strides = [1, 1]} : vector<8x32xbf16> to vector<8x8xbf16>
    %81 = vector.extract_strided_slice %39 {offsets = [0, 16], sizes = [8, 8], strides = [1, 1]} : vector<8x32xbf16> to vector<8x8xbf16>
    "tpu.trace_start"() <{level = 10 : i32, message = "qd,kd->qk"}> : () -> ()
    %cst_33 = arith.constant dense<0.000000e+00> : vector<8x8xf32>
    %82 = tpu.matmul %80, %81, %cst_33 {dimension_numbers = #tpu.dot_dimension_numbers<[1], [1], [0], [0], [0, 0, 1, 0], [], []>} : vector<8x8xbf16>, vector<8x8xbf16>, vector<8x8xf32> -> vector<8x8xf32>
    "tpu.trace_stop"() : () -> ()
    %cst_34 = arith.constant dense<0xFF800000> : vector<8xf32>
    %83 = vector.multi_reduction <maximumf>, %82, %cst_34 [1] : vector<8x8xf32> to vector<8xf32>
    %84 = vector.shape_cast %83 : vector<8xf32> to vector<8x1xf32>
    %85 = vector.broadcast %84 : vector<8x1xf32> to vector<8x8xf32>
    %86 = arith.subf %82, %85 : vector<8x8xf32>
    %87 = math.exp %86 : vector<8x8xf32>
    %cst_35 = arith.constant dense<0.000000e+00> : vector<8xf32>
    %88 = vector.multi_reduction <add>, %87, %cst_35 [1] : vector<8x8xf32> to vector<8xf32>
    %89 = vector.shape_cast %88 : vector<8xf32> to vector<8x1xf32>
    %90 = tpu.reciprocal %89 {approx = true} : vector<8x1xf32> -> vector<8x1xf32>
    %91 = vector.broadcast %90 : vector<8x1xf32> to vector<8x8xf32>
    %92 = arith.mulf %87, %91 : vector<8x8xf32>
    %93 = arith.truncf %92 : vector<8x8xf32> to vector<8x8xbf16>
    %94 = vector.extract_strided_slice %40 {offsets = [0, 16], sizes = [8, 8], strides = [1, 1]} : vector<8x32xbf16> to vector<8x8xbf16>
    %cst_36 = arith.constant dense<0.000000e+00> : vector<8x8xf32>
    %95 = tpu.matmul %93, %94, %cst_36 {dimension_numbers = #tpu.dot_dimension_numbers<[1], [0], [0], [1], [0, 0, 1, 1], [], []>} : vector<8x8xbf16>, vector<8x8xbf16>, vector<8x8xf32> -> vector<8x8xf32>
    %96 = vector.extract_strided_slice %47 {offsets = [0, 24], sizes = [8, 8], strides = [1, 1]} : vector<8x32xbf16> to vector<8x8xbf16>
    %97 = vector.extract_strided_slice %39 {offsets = [0, 24], sizes = [8, 8], strides = [1, 1]} : vector<8x32xbf16> to vector<8x8xbf16>
    "tpu.trace_start"() <{level = 10 : i32, message = "qd,kd->qk"}> : () -> ()
    %cst_37 = arith.constant dense<0.000000e+00> : vector<8x8xf32>
    %98 = tpu.matmul %96, %97, %cst_37 {dimension_numbers = #tpu.dot_dimension_numbers<[1], [1], [0], [0], [0, 0, 1, 0], [], []>} : vector<8x8xbf16>, vector<8x8xbf16>, vector<8x8xf32> -> vector<8x8xf32>
    "tpu.trace_stop"() : () -> ()
    %cst_38 = arith.constant dense<0xFF800000> : vector<8xf32>
    %99 = vector.multi_reduction <maximumf>, %98, %cst_38 [1] : vector<8x8xf32> to vector<8xf32>
    %100 = vector.shape_cast %99 : vector<8xf32> to vector<8x1xf32>
    %101 = vector.broadcast %100 : vector<8x1xf32> to vector<8x8xf32>
    %102 = arith.subf %98, %101 : vector<8x8xf32>
    %103 = math.exp %102 : vector<8x8xf32>
    %cst_39 = arith.constant dense<0.000000e+00> : vector<8xf32>
    %104 = vector.multi_reduction <add>, %103, %cst_39 [1] : vector<8x8xf32> to vector<8xf32>
    %105 = vector.shape_cast %104 : vector<8xf32> to vector<8x1xf32>
    %106 = tpu.reciprocal %105 {approx = true} : vector<8x1xf32> -> vector<8x1xf32>
    %107 = vector.broadcast %106 : vector<8x1xf32> to vector<8x8xf32>
    %108 = arith.mulf %103, %107 : vector<8x8xf32>
    %109 = arith.truncf %108 : vector<8x8xf32> to vector<8x8xbf16>
    %110 = vector.extract_strided_slice %40 {offsets = [0, 24], sizes = [8, 8], strides = [1, 1]} : vector<8x32xbf16> to vector<8x8xbf16>
    %cst_40 = arith.constant dense<0.000000e+00> : vector<8x8xf32>
    %111 = tpu.matmul %109, %110, %cst_40 {dimension_numbers = #tpu.dot_dimension_numbers<[1], [0], [0], [1], [0, 0, 1, 1], [], []>} : vector<8x8xbf16>, vector<8x8xbf16>, vector<8x8xf32> -> vector<8x8xf32>
    %112 = tpu.concatenate %63, %79, %95, %111 in 1 : vector<8x8xf32>, vector<8x8xf32>, vector<8x8xf32>, vector<8x8xf32> -> vector<8x32xf32>
    %113 = arith.truncf %112 : vector<8x32xf32> to vector<8x32xbf16>
    %c0_41 = arith.constant 0 : index
    %c0_42 = arith.constant 0 : index
    %114 = vector.load %arg10[%c0_41, %c0_42] : memref<32x32xbf16, #tpu.memory_space<vmem>>, vector<32x32xbf16>
    %cst_43 = arith.constant dense<0.000000e+00> : vector<8x32xf32>
    %115 = tpu.matmul %113, %114, %cst_43 {dimension_numbers = #tpu.dot_dimension_numbers<[1], [0], [0], [1], [0, 0, 1, 1], [], []>} : vector<8x32xbf16>, vector<32x32xbf16>, vector<8x32xf32> -> vector<8x32xf32>
    %116 = arith.addf %2, %115 : vector<8x32xf32>
    %c0_44 = arith.constant 0 : index
    %c0_45 = arith.constant 0 : index
    %117 = vector.load %arg11[%c0_44, %c0_45] : memref<1x32xf32, #tpu.memory_space<vmem>>, vector<1x32xf32>
    %118 = vector.broadcast %117 : vector<1x32xf32> to vector<8x32xf32>
    %119 = arith.addf %116, %118 : vector<8x32xf32>
    %c0_46 = arith.constant 0 : index
    %c0_47 = arith.constant 0 : index
    %120 = vector.load %arg12[%c0_46, %c0_47] : memref<1x32xf32, #tpu.memory_space<vmem>>, vector<1x32xf32>
    %c0_48 = arith.constant 0 : index
    %c0_49 = arith.constant 0 : index
    %121 = vector.load %arg13[%c0_48, %c0_49] : memref<1x32xf32, #tpu.memory_space<vmem>>, vector<1x32xf32>
    %cst_50 = arith.constant dense<0.000000e+00> : vector<8xf32>
    %122 = vector.multi_reduction <add>, %119, %cst_50 [1] : vector<8x32xf32> to vector<8xf32>
    %123 = vector.shape_cast %122 : vector<8xf32> to vector<8x1xf32>
    %cst_51 = arith.constant 3.200000e+01 : f32
    %124 = vector.broadcast %cst_51 : f32 to vector<8x1xf32>
    %125 = arith.divf %123, %124 : vector<8x1xf32>
    %126 = vector.broadcast %125 : vector<8x1xf32> to vector<8x32xf32>
    %127 = arith.subf %119, %126 : vector<8x32xf32>
    %128 = arith.mulf %127, %127 : vector<8x32xf32>
    %cst_52 = arith.constant dense<0.000000e+00> : vector<8xf32>
    %129 = vector.multi_reduction <add>, %128, %cst_52 [1] : vector<8x32xf32> to vector<8xf32>
    %130 = vector.shape_cast %129 : vector<8xf32> to vector<8x1xf32>
    %cst_53 = arith.constant 3.200000e+01 : f32
    %131 = vector.broadcast %cst_53 : f32 to vector<8x1xf32>
    %132 = arith.divf %130, %131 : vector<8x1xf32>
    %133 = vector.broadcast %125 : vector<8x1xf32> to vector<8x32xf32>
    %134 = arith.subf %119, %133 : vector<8x32xf32>
    %cst_54 = arith.constant 9.99999974E-6 : f32
    %135 = vector.broadcast %cst_54 : f32 to vector<8x1xf32>
    %136 = arith.addf %132, %135 : vector<8x1xf32>
    %137 = math.rsqrt %136 : vector<8x1xf32>
    %138 = vector.broadcast %137 : vector<8x1xf32> to vector<8x32xf32>
    %139 = arith.mulf %134, %138 : vector<8x32xf32>
    %140 = vector.broadcast %120 : vector<1x32xf32> to vector<8x32xf32>
    %141 = arith.mulf %139, %140 : vector<8x32xf32>
    %142 = vector.broadcast %121 : vector<1x32xf32> to vector<8x32xf32>
    %143 = arith.addf %141, %142 : vector<8x32xf32>
    %144 = arith.truncf %143 : vector<8x32xf32> to vector<8x32xbf16>
    %c0_55 = arith.constant 0 : index
    %c0_56 = arith.constant 0 : index
    %145 = vector.load %arg14[%c0_55, %c0_56] : memref<32x128xbf16, #tpu.memory_space<vmem>>, vector<32x128xbf16>
    %cst_57 = arith.constant dense<0.000000e+00> : vector<8x128xf32>
    %146 = tpu.matmul %144, %145, %cst_57 {dimension_numbers = #tpu.dot_dimension_numbers<[1], [0], [0], [1], [0, 0, 1, 1], [], []>} : vector<8x32xbf16>, vector<32x128xbf16>, vector<8x128xf32> -> vector<8x128xf32>
    %c0_58 = arith.constant 0 : index
    %c0_59 = arith.constant 0 : index
    %147 = vector.load %arg15[%c0_58, %c0_59] : memref<1x128xf32, #tpu.memory_space<vmem>>, vector<1x128xf32>
    %148 = vector.broadcast %147 : vector<1x128xf32> to vector<8x128xf32>
    %149 = arith.addf %146, %148 : vector<8x128xf32>
    %cst_60 = arith.constant 1.702000e+00 : f32
    %150 = vector.broadcast %cst_60 : f32 to vector<8x128xf32>
    %151 = arith.mulf %150, %149 : vector<8x128xf32>
    %152 = arith.negf %151 : vector<8x128xf32>
    %153 = math.exp %152 : vector<8x128xf32>
    %cst_61 = arith.constant 1.000000e+00 : f32
    %154 = vector.broadcast %cst_61 : f32 to vector<8x128xf32>
    %155 = arith.addf %154, %153 : vector<8x128xf32>
    %156 = arith.divf %154, %155 : vector<8x128xf32>
    %157 = arith.mulf %149, %156 : vector<8x128xf32>
    %158 = arith.truncf %157 : vector<8x128xf32> to vector<8x128xbf16>
    %c0_62 = arith.constant 0 : index
    %c0_63 = arith.constant 0 : index
    %159 = vector.load %arg16[%c0_62, %c0_63] : memref<128x32xbf16, #tpu.memory_space<vmem>>, vector<128x32xbf16>
    %cst_64 = arith.constant dense<0.000000e+00> : vector<8x32xf32>
    %160 = tpu.matmul %158, %159, %cst_64 {dimension_numbers = #tpu.dot_dimension_numbers<[1], [0], [0], [1], [0, 0, 1, 1], [], []>} : vector<8x128xbf16>, vector<128x32xbf16>, vector<8x32xf32> -> vector<8x32xf32>
    %161 = arith.addf %119, %160 : vector<8x32xf32>
    %c0_65 = arith.constant 0 : index
    %c0_66 = arith.constant 0 : index
    %162 = vector.load %arg17[%c0_65, %c0_66] : memref<1x32xf32, #tpu.memory_space<vmem>>, vector<1x32xf32>
    %163 = vector.broadcast %162 : vector<1x32xf32> to vector<8x32xf32>
    %164 = arith.addf %161, %163 : vector<8x32xf32>
    %165 = arith.truncf %164 : vector<8x32xf32> to vector<8x32xbf16>
    %c0_67 = arith.constant 0 : index
    %c0_68 = arith.constant 0 : index
    %c0_69 = arith.constant 0 : index
    %166 = vector.load %arg18[%c0_67, %c0_68, %c0_69] : memref<1x8x32xbf16, #tpu.memory_space<vmem>>, vector<1x8x32xbf16>
    %167 = vector.shape_cast %166 : vector<1x8x32xbf16> to vector<8x32xbf16>
    %168 = vector.shape_cast %165 : vector<8x32xbf16> to vector<1x8x32xbf16>
    tpu.vector_store %arg18[%c0_67, %c0_68, %c0_69], %168 {strides = array<i32>} : memref<1x8x32xbf16, #tpu.memory_space<vmem>>, vector<1x8x32xbf16>,
    return
  }
  func.func @transform_0(%arg0: i32) -> (i32, i32, i32) {
    %c0_i32 = arith.constant 0 : i32
    %c0_i32_0 = arith.constant 0 : i32
    %c0_i32_1 = arith.constant 0 : i32
    return %arg0, %c0_i32, %c0_i32_0 : i32, i32, i32
  }
  func.func @transform_1(%arg0: i32) -> (i32, i32) {
    %c0_i32 = arith.constant 0 : i32
    %c0_i32_0 = arith.constant 0 : i32
    %c0_i32_1 = arith.constant 0 : i32
    return %c0_i32, %c0_i32_0 : i32, i32
  }
  func.func @transform_2(%arg0: i32) -> (i32, i32) {
    %c0_i32 = arith.constant 0 : i32
    %c0_i32_0 = arith.constant 0 : i32
    %c0_i32_1 = arith.constant 0 : i32
    return %c0_i32, %c0_i32_0 : i32, i32
  }
  func.func @transform_3(%arg0: i32) -> (i32, i32) {
    %c0_i32 = arith.constant 0 : i32
    %c0_i32_0 = arith.constant 0 : i32
    %c0_i32_1 = arith.constant 0 : i32
    return %c0_i32, %c0_i32_0 : i32, i32
  }
  func.func @transform_4(%arg0: i32) -> (i32, i32) {
    %c0_i32 = arith.constant 0 : i32
    %c0_i32_0 = arith.constant 0 : i32
    %c0_i32_1 = arith.constant 0 : i32
    return %c0_i32, %c0_i32_0 : i32, i32
  }
  func.func @transform_5(%arg0: i32) -> (i32, i32) {
    %c0_i32 = arith.constant 0 : i32
    %c0_i32_0 = arith.constant 0 : i32
    %c0_i32_1 = arith.constant 0 : i32
    return %c0_i32, %c0_i32_0 : i32, i32
  }
  func.func @transform_6(%arg0: i32) -> (i32, i32) {
    %c0_i32 = arith.constant 0 : i32
    %c0_i32_0 = arith.constant 0 : i32
    %c0_i32_1 = arith.constant 0 : i32
    return %c0_i32, %c0_i32_0 : i32, i32
  }
  func.func @transform_7(%arg0: i32) -> (i32, i32) {
    %c0_i32 = arith.constant 0 : i32
    %c0_i32_0 = arith.constant 0 : i32
    %c0_i32_1 = arith.constant 0 : i32
    return %c0_i32, %c0_i32_0 : i32, i32
  }
  func.func @transform_8(%arg0: i32) -> (i32, i32) {
    %c0_i32 = arith.constant 0 : i32
    %c0_i32_0 = arith.constant 0 : i32
    %c0_i32_1 = arith.constant 0 : i32
    return %c0_i32, %c0_i32_0 : i32, i32
  }
  func.func @transform_9(%arg0: i32) -> (i32, i32) {
    %c0_i32 = arith.constant 0 : i32
    %c0_i32_0 = arith.constant 0 : i32
    %c0_i32_1 = arith.constant 0 : i32
    return %c0_i32, %c0_i32_0 : i32, i32
  }
  func.func @transform_10(%arg0: i32) -> (i32, i32) {
    %c0_i32 = arith.constant 0 : i32
    %c0_i32_0 = arith.constant 0 : i32
    %c0_i32_1 = arith.constant 0 : i32
    return %c0_i32, %c0_i32_0 : i32, i32
  }
  func.func @transform_11(%arg0: i32) -> (i32, i32) {
    %c0_i32 = arith.constant 0 : i32
    %c0_i32_0 = arith.constant 0 : i32
    %c0_i32_1 = arith.constant 0 : i32
    return %c0_i32, %c0_i32_0 : i32, i32
  }
  func.func @transform_12(%arg0: i32) -> (i32, i32) {
    %c0_i32 = arith.constant 0 : i32
    %c0_i32_0 = arith.constant 0 : i32
    %c0_i32_1 = arith.constant 0 : i32
    return %c0_i32, %c0_i32_0 : i32, i32
  }
  func.func @transform_13(%arg0: i32) -> (i32, i32) {
    %c0_i32 = arith.constant 0 : i32
    %c0_i32_0 = arith.constant 0 : i32
    %c0_i32_1 = arith.constant 0 : i32
    return %c0_i32, %c0_i32_0 : i32, i32
  }
  func.func @transform_14(%arg0: i32) -> (i32, i32) {
    %c0_i32 = arith.constant 0 : i32
    %c0_i32_0 = arith.constant 0 : i32
    %c0_i32_1 = arith.constant 0 : i32
    return %c0_i32, %c0_i32_0 : i32, i32
  }
  func.func @transform_15(%arg0: i32) -> (i32, i32) {
    %c0_i32 = arith.constant 0 : i32
    %c0_i32_0 = arith.constant 0 : i32
    %c0_i32_1 = arith.constant 0 : i32
    return %c0_i32, %c0_i32_0 : i32, i32
  }
  func.func @transform_16(%arg0: i32) -> (i32, i32) {
    %c0_i32 = arith.constant 0 : i32
    %c0_i32_0 = arith.constant 0 : i32
    %c0_i32_1 = arith.constant 0 : i32
    return %c0_i32, %c0_i32_0 : i32, i32
  }
  func.func @transform_17(%arg0: i32) -> (i32, i32, i32) {
    %c0_i32 = arith.constant 0 : i32
    %c0_i32_0 = arith.constant 0 : i32
    %c0_i32_1 = arith.constant 0 : i32
    return %arg0, %c0_i32, %c0_i32_0 : i32, i32, i32
  }
}

</mosaic_0001>

<bundles_post_ra>
// kernel: transformer_forward.2
= control target key start
LH: loop header
LB: loop body
LE: loop exit
PB: predicated region body
PF: predicated region fallthrough
CT: control target
= control target key end

     0   :  { %s1936_s24 = smov 0   ;;  %s2157_s0 = inlined_call_operand.vmem [shape: bf16[2,8,32], index: 0, kind: input, shape index: {}]   ;;  %s2158_s1 = inlined_call_operand.vmem [shape: f32[1,32], index: 1, kind: input, shape index: {}]   ;;  %s2159_s2 = inlined_call_operand.vmem [shape: f32[1,32], index: 2, kind: input, shape index: {}]   ;;  %s2160_s3 = inlined_call_operand.vmem [shape: bf16[32,32], index: 3, kind: input, shape index: {}]   ;;  %s2161_s4 = inlined_call_operand.vmem [shape: bf16[32,32], index: 4, kind: input, shape index: {}]   ;;  %s2162_s5 = inlined_call_operand.vmem [shape: bf16[32,32], index: 5, kind: input, shape index: {}]   ;;  %s2163_s6 = inlined_call_operand.vmem [shape: f32[1,32], index: 6, kind: input, shape index: {}]   ;;  %s2164_s7 = inlined_call_operand.vmem [shape: f32[1,32], index: 7, kind: input, shape index: {}]   ;;  %s2165_s8 = inlined_call_operand.vmem [shape: f32[1,32], index: 8, kind: input, shape index: {}]   ;;  %s2166_s9 = inlined_call_operand.vmem [shape: bf16[32,32], index: 9, kind: input, shape index: {}]   ;;  %s2167_s10 = inlined_call_operand.vmem [shape: f32[1,32], index: 10, kind: input, shape index: {}]   ;;  %s2168_s11 = inlined_call_operand.vmem [shape: f32[1,32], index: 11, kind: input, shape index: {}]   ;;  %s2169_s12 = inlined_call_operand.vmem [shape: f32[1,32], index: 12, kind: input, shape index: {}]   ;;  %s2170_s13 = inlined_call_operand.vmem [shape: bf16[32,128], index: 13, kind: input, shape index: {}]   ;;  %s2171_s14 = inlined_call_operand.vmem [shape: f32[1,128], index: 14, kind: input, shape index: {}]   ;;  %s2172_s15 = inlined_call_operand.vmem [shape: bf16[128,32], index: 15, kind: input, shape index: {}]   ;;  %s2173_s16 = inlined_call_operand.vmem [shape: f32[1,32], index: 16, kind: input, shape index: {}]   ;;  %s2174_s17 = inlined_call_operand.vmem [shape: bf16[2,8,32], index: 17, kind: output, shape index: {}]  }
   0x1   :  { %2175 = sst [smem:[#allocation2_spill]] %s2157_s0 }
   0x2   :  { %2176 = sst [smem:[#allocation3_spill]] %s2158_s1 }
   0x3 LB: > { %s1573_s25 = sadd.s32 4294967295, %s1836_s24   ;;  %p1577_p0 = scmp.ge.s32.totalorder %s1836_s24, 1  ;;  %s1836_s24 = sphi %s1936_s24, %s27_s24  }
   0x4   : > { %p486_p1 = scmp.lt.s32.totalorder %s1836_s24, 3 }
   0x6   : > { %p487_p2 = pnand %p1577_p0, %p486_p1 }
   0x7   : > { %p536_p3 = scmp.lt.s32.totalorder (!%p487_p2), %s1573_s25, 1  ;;  %s2177_s29 = sld [smem:[#allocation2_spill]] (!%p487_p2) }
   0x8   : > { %490 = sbr.rel (%p487_p2) target bundleno = 2468 (0x9a4), region = 88  ;;  %s2178_s22 = sld [smem:[#allocation3_spill]] (!%p487_p2) }
   0x9   : > { %s1840_s23 = smov (!%p487_p2), 112   ;;  %s1841_s27 = smov (!%p487_p2), 120  }
   0xa   : > { %s1842_s18 = smov (!%p487_p2), 104  }
   0xd   : > { %s2180_s25 = smov (!%p536_p3, %s1573_s25), 1  ;;  %vm549_vm0 = vcmask 261120   ;;  %v1788_v8 = vld [vmem:[%s2161_s4 + $0x8] sm:$0xff]   ;;  %v1838_v9 = vmov 0.0   ;;  %vm1839_vm1 = vmmov 0   ;;  %v1789_v10 = vld [vmem:[%s2161_s4] sm:$0xff]  }
   0xe   : > { %s1578_s26 = sshll.u32 %s2180_s25, 2  ;;  %1664 = vmatprep.subr.bf16.mxu0 %v1838_v9  ;;  %1668 = vmatprep.mubr.msk.bf16.mxu0 %vm1839_vm1, %v1838_v9  ;;  %v1580_v15 = vld [vmem:[%s2178_s22] ss:$0 sm:$0xff]  ;;  %v1790_v20 = vld [vmem:[%s2162_s5 + $0x8] sm:$0xff]   ;;  %vm774_vm2 = vcmask 64512   ;;  %vm836_vm3 = vcmask 1043456  }
   0xf   : > { %s539_s0 = scalar_lea.vmem %s2177_s29, %s1578_s26  ;;  %1665 = vmatpush3.bf16.msra.mxu0 %v1788_v8  ;;  %1688 = vmatprep.subr.bf16.mxu1 %v1838_v9  ;;  %v1581_v17 = vld [vmem:[%s2159_s2] ss:$0 sm:$0xff]  ;;  %v1792_v23 = vld [vmem:[%s2160_s3 + $0x8] sm:$0xff]   ;;  %s1843_s22 = smov 8   ;;  %vm1226_vm4 = vcmask 130048   ;;  %vm1228_vm5 = vcmask 195584  }
  0x10   : > { %v545_v0 = vld [vmem:[%s539_s0] sm:$0xf]  ;;  %1666 = vmatprep.subr.bf16.mxu0 %v1838_v9  ;;  %1690 = vmatprep.mubr.msk.bf16.mxu1 %vm1839_vm1, %v1838_v9  ;;  %s543_s21 = scalar_lea.vmem %s2174_s17, %s1578_s26  ;;  %vm1518_vm6 = vcmask 257024  }
  0x11   : > { %v1952_v1 = vunpack.c.l.bf16 %v545_v0  ;;  %v1791_v22 = vld [vmem:[%s2162_s5] sm:$0xff]  }
  0x12   : > { %v1793_v24 = vld [vmem:[%s2160_s3] sm:$0xff]  }
  0x13   : > { %v550_v2 = vsel %vm549_vm0, %v1952_v1, 0.0  ;;  %1667 = vmatpush3.bf16.msra.mxu0 %v1789_v10  ;;  %v1582_v25 = vld [vmem:[%s2164_s7] ss:$0 sm:$0xff] }
  0x14   : > { %551 = vadd.xlane.f32.xlu0 %v550_v2  ;;  %1672 = vmatprep.subr.bf16.mxu0 %v1838_v9  ;;  %v1586_v33 = vld [vmem:[%s2165_s8] ss:$0 sm:$0xff] }
  0x15   : > { %v1590_v41 = vld [vmem:[%s2163_s6] ss:$0 sm:$0xff] }
  0x9d   : > { %v552_v3 = vpop.xlane.xlu0 %551 }
  0x9e   : > { %v554_v4 = vmul.f32 0.03125, %v552_v3 }
  0xa0   : > { %v555_v5 = vsub.f32 %v1952_v1, %v554_v4 }
  0xa2   : > { %v556_v6 = vmul.f32 %v555_v5, %v555_v5 }
  0xa4   : > { %v557_v7 = vsel %vm549_vm0, %v556_v6, 0.0 }
  0xa5   : > { %558 = vadd.xlane.f32.xlu0 %v557_v7 }
 0x12e   : > { %v559_v11 = vpop.xlane.xlu0 %558 }
 0x12f   : > { %v560_v12 = vmul.f32 0.03125, %v559_v11 }
 0x131   : > { %v561_v13 = vadd.f32 1e-05, %v560_v12 }
 0x133   : > { %1806 = vrsqrt.f32 %v561_v13 }
 0x140   : > { %v1807_v14 = vpop.eup %1806 }
 0x141   : > { %v563_v16 = vmul.f32 %v1807_v14, %v555_v5 }
 0x143   : > { %v570_v18 = vmul.f32 %v1580_v15, %v563_v16 }
 0x145   : > { %v577_v19 = vadd.f32 %v1581_v17, %v570_v18 }
 0x147   : > { %v578_v21 = vpack.c.bf16 %v577_v19, %v577_v19 }
 0x149   : > { %1669 = vmatmul.mubr.msk.bf16.vlgmr.msra.gmra.mxu0 %vm549_vm0, %v578_v21 }
 0x14a   : > { %1673 = vmatpush3.bf16.msra.mxu0 %v1790_v20  ;;  %1676 = vmatprep.mubr.msk.bf16.mxu0 %vm1839_vm1, %v1838_v9 }
 0x14b   : > { %1674 = vmatprep.subr.bf16.mxu0 %v1838_v9 }
 0x14e   : > { %1675 = vmatpush3.bf16.msra.mxu0 %v1791_v22 }
 0x14f   : > { %1680 = vmatprep.subr.bf16.mxu0 %v1838_v9 }
 0x151   : > { %1677 = vmatmul.mubr.msk.bf16.vlgmr.msra.gmra.mxu0 %vm549_vm0, %v578_v21 }
 0x152   : > { %1681 = vmatpush3.bf16.msra.mxu0 %v1792_v23  ;;  %1684 = vmatprep.mubr.msk.bf16.mxu0 %vm1839_vm1, %v1838_v9 }
 0x153   : > { %1682 = vmatprep.subr.bf16.mxu0 %v1838_v9 }
 0x156   : > { %1683 = vmatpush3.bf16.msra.mxu0 %v1793_v24 }
 0x157   : > { %1694 = vmatprep.subr.bf16.mxu0 %v1838_v9 }
 0x159   : > { %1685 = vmatmul.mubr.msk.bf16.vlgmr.msra.gmra.mxu0 %vm549_vm0, %v578_v21 }
 0x15a   : > { %1696 = vmatprep.mubr.msk.bf16.mxu0 %vm1839_vm1, %v1838_v9 }
 0x209   : > { %v639_v26 = vpop.f32.mrf.mxu0 }
 0x20a   : > { %v640_v27 = vadd.f32 %v1582_v25, %v639_v26 }
 0x20b   : > { %v1670_v28 = vpop.f32.mrf.mxu0 }
 0x20c   : > { %v708_v29 = vpack.c.bf16 %v640_v27, %v640_v27 }
 0x20d   : > { %v642_v30 = vpop.f32.mrf.mxu0 }
 0x20e   : > { %995 = vrot.lane.b32.xlu0 %v708_v29, %s1840_s23  ;;  %884 = vrot.lane.b32.xlu1 %v708_v29, %s1841_s27  ;;  %v779_v31 = vsel %vm774_vm2, %v708_v29, 0 }
 0x20f   : > { %v1671_v32 = vpop.f32.mrf.mxu0  ;;  %1689 = vmatpush3.bf16.xpose.msra.mxu1 %v779_v31 }
 0x210   : > { %1700 = vmatprep.subr.bf16.mxu1 %v1838_v9 }
 0x211   : > { %v702_v34 = vpop.f32.mrf.mxu0 }
 0x212   : > { %v703_v35 = vadd.f32 %v1586_v33, %v702_v34 }
 0x213   : > { %v1678_v36 = vpop.f32.mrf.mxu0 }
 0x214   : > { %v2013_v37 = vpack.c.bf16 %v703_v35, %v703_v35 }
 0x215   : > { %v705_v38 = vpop.f32.mrf.mxu0 }
 0x216   : > { %v838_v39 = vsel %vm836_vm3, %v2013_v37, 0 }
 0x217   : > { %v1679_v40 = vpop.f32.mrf.mxu0  ;;  %1695 = vmatpush3.bf16.msra.mxu0 %v838_v39 }
 0x218   : > { %1706 = vmatprep.subr.bf16.mxu0 %v1838_v9 }
 0x219   : > { %v767_v42 = vpop.f32.mrf.mxu0 }
 0x21a   : > { %v768_v43 = vadd.f32 %v1590_v41, %v767_v42 }
 0x21b   : > { %v1686_v44 = vpop.f32.mrf.mxu0 }
 0x21c   : > { %v773_v45 = vpack.c.bf16 %v768_v43, %v768_v43 }
 0x21d   : > { %v770_v46 = vpop.f32.mrf.mxu0 }
 0x21e   : > { %881 = vrot.lane.b32.xlu1 %v773_v45, %s1841_s27  ;;  %1691 = vmatmul.mubr.msk.bf16.vlgmr.msra.gmra.mxu1 %vm774_vm2, %v773_v45 }
 0x21f   : > { %v1687_v47 = vpop.f32.mrf.mxu0  ;;  %1702 = vmatprep.mubr.msk.bf16.mxu1 %vm1839_vm1, %v1838_v9 }
 0x222   : > { %993 = vrot.lane.b32.xlu1 %v773_v45, %s1840_s23 }
 0x226   : > { %1105 = vrot.lane.b32.xlu1 %v708_v29, %s1842_s18 }
 0x22a   : > { %1103 = vrot.lane.b32.xlu1 %v773_v45, %s1842_s18 }
 0x280   : > { %v885_v48 = vpop.permute.xlu1 %884  ;;  %v996_v50 = vpop.permute.xlu0 %995 }
 0x281   : > { %v890_v49 = vsel %vm774_vm2, %v885_v48, 0  ;;  %v1001_v52 = vsel %vm774_vm2, %v996_v50, 0 }
 0x282   : > { %1701 = vmatpush3.bf16.xpose.msra.mxu1 %v890_v49 }
 0x283   : > { %1712 = vmatprep.subr.bf16.mxu1 %v1838_v9 }
 0x290   : > { %v882_v51 = vpop.permute.xlu1 %881 }
 0x291   : > { %1703 = vmatmul.mubr.msk.bf16.vlgmr.msra.gmra.mxu1 %vm774_vm2, %v882_v51 }
 0x292   : > { %1713 = vmatpush3.bf16.xpose.msra.mxu1 %v1001_v52  ;;  %1714 = vmatprep.mubr.msk.bf16.mxu1 %vm1839_vm1, %v1838_v9 }
 0x293   : > { %1724 = vmatprep.subr.bf16.mxu1 %v1838_v9 }
 0x294   : > { %v994_v53 = vpop.permute.xlu1 %993 }
 0x298   : > { %v1106_v54 = vpop.permute.xlu1 %1105 }
 0x299   : > { %v1111_v55 = vsel %vm774_vm2, %v1106_v54, 0  ;;  %1715 = vmatmul.mubr.msk.bf16.vlgmr.msra.gmra.mxu1 %vm774_vm2, %v994_v53 }
 0x29a   : > { %1725 = vmatpush3.bf16.xpose.msra.mxu1 %v1111_v55  ;;  %1726 = vmatprep.mubr.msk.bf16.mxu1 %vm1839_vm1, %v1838_v9 }
 0x29b   : > { %1736 = vmatprep.subr.bf16.mxu1 %v1838_v9 }
 0x29c   : > { %v1104_v56 = vpop.permute.xlu1 %1103 }
 0x2a1   : > { %1727 = vmatmul.mubr.msk.bf16.vlgmr.msra.gmra.mxu1 %vm774_vm2, %v1104_v56 }
 0x2a2   : > { %1740 = vmatprep.mubr.msk.bf16.mxu1 %vm1839_vm1, %v1838_v9 }
 0x2de   : > { %v815_v57 = vpop.f32.mrf.mxu1 }
 0x2df   : > { %v821_v58 = vsel %vm774_vm2, %v815_v57, -inf }
 0x2e0   : > { %822 = vmax.xlane.f32.xlu1 %v821_v58  ;;  %v1692_v59 = vpop.f32.mrf.mxu1 }
 0x2e2   : > { %v818_v60 = vpop.f32.mrf.mxu1 }
 0x2e4   : > { %v1693_v61 = vpop.f32.mrf.mxu1 }
 0x2e5   : > { %v1794_v61 = vld [vmem:[%s2166_s9 + $0x8] sm:$0xff]  }
 0x2e6   : > { %1737 = vmatpush3.bf16.msra.mxu1 %v1794_v61 }
 0x2e7   : > { %1738 = vmatprep.subr.bf16.mxu1 %v1838_v9 }
 0x351   : > { %v926_v62 = vpop.f32.mrf.mxu1 }
 0x352   : > { %v932_v63 = vsel %vm774_vm2, %v926_v62, -inf }
 0x353   : > { %933 = vmax.xlane.f32.xlu0 %v932_v63  ;;  %v1704_v0 = vpop.f32.mrf.mxu1 }
 0x355   : > { %v929_v2 = vpop.f32.mrf.mxu1 }
 0x357   : > { %v1705_v3 = vpop.f32.mrf.mxu1 }
 0x359   : > { %v1037_v4 = vpop.f32.mrf.mxu1 }
 0x35a   : > { %v1043_v5 = vsel %vm774_vm2, %v1037_v4, -inf }
 0x35b   : > { %1044 = vmax.xlane.f32.xlu1 %v1043_v5  ;;  %v1716_v6 = vpop.f32.mrf.mxu1 }
 0x35d   : > { %v1040_v7 = vpop.f32.mrf.mxu1 }
 0x35f   : > { %v1717_v8 = vpop.f32.mrf.mxu1 }
 0x361   : > { %v1147_v10 = vpop.f32.mrf.mxu1 }
 0x362   : > { %v1153_v11 = vsel %vm774_vm2, %v1147_v10, -inf }
 0x363   : > { %1154 = vmax.xlane.f32.xlu1 %v1153_v11  ;;  %v1728_v12 = vpop.f32.mrf.mxu1 }
 0x365   : > { %v1150_v13 = vpop.f32.mrf.mxu1 }
 0x367   : > { %v1729_v14 = vpop.f32.mrf.mxu1 }
 0x369   : > { %v823_v15 = vpop.xlane.xlu1 %822 }
 0x36a   : > { %v824_v16 = vsub.f32 %v815_v57, %v823_v15 }
 0x36c   : > { %v825_v17 = vmul.f32 1.442695, %v824_v16 }
 0x36e   : > { %1808 = vpow2.f32 %v825_v17 }
 0x37b   : > { %v1809_v18 = vpop.eup %1808 }
 0x37c   : > { %v827_v19 = vsel %vm774_vm2, %v1809_v18, 0.0 }
 0x37d   : > { %828 = vadd.xlane.f32.xlu0 %v827_v19 }
 0x3dc   : > { %v934_v20 = vpop.xlane.xlu0 %933 }
 0x3dd   : > { %v935_v21 = vsub.f32 %v926_v62, %v934_v20  ;;  %v1795_v62 = vld [vmem:[%s2166_s9] sm:$0xff]  }
 0x3de   : > { %1739 = vmatpush3.bf16.msra.mxu1 %v1795_v62 }
 0x3df   : > { %v936_v22 = vmul.f32 1.442695, %v935_v21  ;;  %1752 = vmatprep.subr.bf16.mxu1 %v1838_v9  ;;  %v1605_v21 = vld [vmem:[%s2167_s10] ss:$0 sm:$0xff] }
 0x3e1   : > { %1810 = vpow2.f32 %v936_v22 }
 0x3e4   : > { %v1045_v23 = vpop.xlane.xlu1 %1044 }
 0x3e5   : > { %v1046_v24 = vsub.f32 %v1037_v4, %v1045_v23 }
 0x3e7   : > { %v1047_v25 = vmul.f32 1.442695, %v1046_v24 }
 0x3e9   : > { %1812 = vpow2.f32 %v1047_v25 }
 0x3ec   : > { %v1155_v31 = vpop.xlane.xlu1 %1154 }
 0x3ed   : > { %v1156_v32 = vsub.f32 %v1147_v10, %v1155_v31 }
 0x3ee   : > { %v1811_v26 = vpop.eup %1810 }
 0x3ef   : > { %v938_v27 = vsel %vm774_vm2, %v1811_v26, 0.0  ;;  %v1157_v33 = vmul.f32 1.442695, %v1156_v32 }
 0x3f0   : > { %939 = vadd.xlane.f32.xlu1 %v938_v27 }
 0x3f6   : > { %v1813_v28 = vpop.eup %1812 }
 0x3f7   : > { %v1049_v29 = vsel %vm774_vm2, %v1813_v28, 0.0 }
 0x3f8   : > { %1050 = vadd.xlane.f32.xlu0 %v1049_v29 }
 0x401   : > { %1055 = vrot.lane.b32.xlu1 %v2013_v37, %s1840_s23  ;;  %s1844_s23 = smov 16  }
 0x406   : > { %v829_v30 = vpop.xlane.xlu0 %828 }
 0x407   : > { %1814 = vrcp.f32 %v829_v30 }
 0x408   : > { %1816 = vpow2.f32 %v1157_v33  ;;  %v1797_v33 = vld [vmem:[%s2170_s13] sm:$0xff]  }
 0x40e   : > { %945 = vrot.lane.b32.xlu0 %v2013_v37, %s1841_s27  ;;  %s1845_s27 = smov 24  }
 0x414   : > { %v1815_v34 = vpop.eup %1814 }
 0x415   : > { %v831_v35 = vmul.f32 %v1815_v34, %v1809_v18  ;;  %v1817_v38 = vpop.eup %1816 }
 0x416   : > { %v1159_v39 = vsel %vm774_vm2, %v1817_v38, 0.0 }
 0x417   : > { %v832_v36 = vpack.c.bf16 %v831_v35, %v831_v35 }
 0x419   : > { %1697 = vmatmul.mubr.msk.bf16.vlgmr.msra.gmra.mxu0 %vm774_vm2, %v832_v36 }
 0x41a   : > { %1708 = vmatprep.mubr.msk.bf16.mxu0 %vm1839_vm1, %v1838_v9 }
 0x425   : > { %1160 = vadd.xlane.f32.xlu1 %v1159_v39  ;;  %v1606_v39 = vld [vmem:[%s2168_s11] ss:$0 sm:$0xff] }
 0x436   : > { %1165 = vrot.lane.b32.xlu1 %v2013_v37, %s1842_s18 }
 0x479   : > { %v940_v40 = vpop.xlane.xlu1 %939 }
 0x47a   : > { %1818 = vrcp.f32 %v940_v40 }
 0x47d   : > { %v1056_v46 = vpop.permute.xlu1 %1055 }
 0x47e   : > { %v1061_v48 = vsel %vm836_vm3, %v1056_v46, 0  ;;  %v1799_v46 = vld [vmem:[%s2172_s15 + $0x30] sm:$0xff]  }
 0x481   : > { %v1051_v41 = vpop.xlane.xlu0 %1050 }
 0x482   : > { %1820 = vrcp.f32 %v1051_v41  ;;  %v1607_v41 = vld [vmem:[%s2169_s12] ss:$0 sm:$0xff] }
 0x485   : > { %v946_v42 = vpop.permute.xlu0 %945 }
 0x486   : > { %v951_v43 = vsel %vm836_vm3, %v946_v42, 0 }
 0x487   : > { %v1819_v44 = vpop.eup %1818  ;;  %1707 = vmatpush3.bf16.msra.mxu0 %v951_v43 }
 0x488   : > { %1718 = vmatprep.subr.bf16.mxu0 %v1838_v9  ;;  %v942_v45 = vmul.f32 %v1819_v44, %v1811_v26 }
 0x48a   : > { %v943_v47 = vpack.c.bf16 %v942_v45, %v942_v45  ;;  %v1798_v45 = vld [vmem:[%s2172_s15 + $0x38] sm:$0xff]  }
 0x48c   : > { %1709 = vmatmul.mubr.msk.bf16.vlgmr.msra.gmra.mxu0 %vm774_vm2, %v943_v47  ;;  %v1800_v47 = vld [vmem:[%s2172_s15 + $0x28] sm:$0xff]  }
 0x48d   : > { %1719 = vmatpush3.bf16.msra.mxu0 %v1061_v48  ;;  %1720 = vmatprep.mubr.msk.bf16.mxu0 %vm1839_vm1, %v1838_v9  ;;  %v1801_v48 = vld [vmem:[%s2172_s15 + $0x20] sm:$0xff]  }
 0x48e   : > { %1730 = vmatprep.subr.bf16.mxu0 %v1838_v9 }
 0x48f   : > { %v1821_v37 = vpop.eup %1820 }
 0x490   : > { %v1053_v49 = vmul.f32 %v1821_v37, %v1813_v28  ;;  %v1802_v37 = vld [vmem:[%s2172_s15 + $0x18] sm:$0xff]  }
 0x492   : > { %v1054_v50 = vpack.c.bf16 %v1053_v49, %v1053_v49  ;;  %v1803_v49 = vld [vmem:[%s2172_s15 + $0x10] sm:$0xff]  }
 0x494   : > { %1721 = vmatmul.mubr.msk.bf16.vlgmr.msra.gmra.mxu0 %vm774_vm2, %v1054_v50  ;;  %v1804_v50 = vld [vmem:[%s2172_s15 + $0x8] sm:$0xff]  }
 0x495   : > { %1732 = vmatprep.mubr.msk.bf16.mxu0 %vm1839_vm1, %v1838_v9 }
 0x4ae   : > { %v1161_v51 = vpop.xlane.xlu1 %1160 }
 0x4af   : > { %1822 = vrcp.f32 %v1161_v51  ;;  %v1805_v51 = vld [vmem:[%s2172_s15] sm:$0xff]  }
 0x4b2   : > { %v1166_v52 = vpop.permute.xlu1 %1165 }
 0x4b3   : > { %v1171_v53 = vsel %vm836_vm3, %v1166_v52, 0  ;;  %v1608_v52 = vld [vmem:[%s2171_s14] ss:$0 sm:$0xff] }
 0x4b4   : > { %1731 = vmatpush3.bf16.msra.mxu0 %v1171_v53 }
 0x4b5   : > { %1744 = vmatprep.subr.bf16.mxu0 %v1838_v9 }
 0x4bc   : > { %v1823_v54 = vpop.eup %1822 }
 0x4bd   : > { %v1163_v55 = vmul.f32 %v1823_v54, %v1817_v38 }
 0x4bf   : > { %v1164_v56 = vpack.c.bf16 %v1163_v55, %v1163_v55 }
 0x4c1   : > { %1733 = vmatmul.mubr.msk.bf16.vlgmr.msra.gmra.mxu0 %vm774_vm2, %v1164_v56 }
 0x4c2   : > { %1748 = vmatprep.mubr.msk.bf16.mxu0 %vm1839_vm1, %v1838_v9 }
 0x4d9   : > { %v874_v57 = vpop.f32.mrf.mxu0 }
 0x4db   : > { %v1698_v58 = vpop.f32.mrf.mxu0 }
 0x4dd   : > { %v877_v59 = vpop.f32.mrf.mxu0 }
 0x4df   : > { %v1699_v60 = vpop.f32.mrf.mxu0 }
 0x54c   : > { %v987_v63 = vpop.f32.mrf.mxu0 }
 0x54d   : > { %1214 = vrot.lane.b32.xlu0 %v987_v63, %s1843_s22 }
 0x54e   : > { %v1710_v0 = vpop.f32.mrf.mxu0 }
 0x550   : > { %v990_v2 = vpop.f32.mrf.mxu0 }
 0x551   : > { %v1621_v2 = vld [vmem:[%s2173_s16] ss:$0 sm:$0xff] }
 0x552   : > { %v1711_v3 = vpop.f32.mrf.mxu0 }
 0x554   : > { %v1097_v4 = vpop.f32.mrf.mxu0 }
 0x555   : > { %1218 = vrot.lane.b32.xlu1 %v1097_v4, %s1844_s23 }
 0x556   : > { %v1722_v5 = vpop.f32.mrf.mxu0 }
 0x558   : > { %v1100_v6 = vpop.f32.mrf.mxu0 }
 0x55a   : > { %v1723_v7 = vpop.f32.mrf.mxu0 }
 0x581   : > { %v1207_v8 = vpop.f32.mrf.mxu0 }
 0x582   : > { %1222 = vrot.lane.b32.xlu0 %v1207_v8, %s1845_s27 }
 0x583   : > { %v1734_v10 = vpop.f32.mrf.mxu0 }
 0x585   : > { %v1210_v11 = vpop.f32.mrf.mxu0 }
 0x587   : > { %v1735_v12 = vpop.f32.mrf.mxu0 }
 0x5bf   : > { %v1215_v13 = vpop.permute.xlu0 %1214 }
 0x5c0   : > { %v1225_v15 = vsel %vm774_vm2, %v874_v57, %v1215_v13 }
 0x5c7   : > { %v1219_v14 = vpop.permute.xlu1 %1218 }
 0x5c8   : > { %v1227_v16 = vsel %vm1226_vm4, %v1225_v15, %v1219_v14 }
 0x5f4   : > { %v1223_v17 = vpop.permute.xlu0 %1222 }
 0x5f5   : > { %v1229_v18 = vsel %vm1228_vm5, %v1227_v16, %v1223_v17 }
 0x5f6   : > { %v1230_v19 = vpack.c.bf16 %v1229_v18, %v1229_v18 }
 0x5f8   : > { %1741 = vmatmul.mubr.msk.bf16.vlgmr.msra.gmra.mxu1 %vm549_vm0, %v1230_v19 }
 0x5f9   : > { %1768 = vmatprep.mubr.msk.bf16.mxu1 %vm1839_vm1, %v1838_v9  ;;  %1753 = vmatpush3.bf16.msra.mxu1 %v1798_v45 }
 0x5fa   : > { %1754 = vmatprep.subr.bf16.mxu1 %v1838_v9 }
 0x5fd   : > { %1755 = vmatpush3.bf16.msra.mxu1 %v1799_v46 }
 0x5fe   : > { %1756 = vmatprep.subr.bf16.mxu1 %v1838_v9 }
 0x601   : > { %1757 = vmatpush3.bf16.msra.mxu1 %v1800_v47 }
 0x602   : > { %1758 = vmatprep.subr.bf16.mxu1 %v1838_v9 }
 0x605   : > { %1759 = vmatpush3.bf16.msra.mxu1 %v1801_v48 }
 0x606   : > { %1760 = vmatprep.subr.bf16.mxu1 %v1838_v9 }
 0x609   : > { %1761 = vmatpush3.bf16.msra.mxu1 %v1802_v37 }
 0x60a   : > { %1762 = vmatprep.subr.bf16.mxu1 %v1838_v9 }
 0x60d   : > { %1763 = vmatpush3.bf16.msra.mxu1 %v1803_v49 }
 0x60e   : > { %1764 = vmatprep.subr.bf16.mxu1 %v1838_v9 }
 0x611   : > { %1765 = vmatpush3.bf16.msra.mxu1 %v1804_v50 }
 0x612   : > { %1766 = vmatprep.subr.bf16.mxu1 %v1838_v9 }
 0x615   : > { %1767 = vmatpush3.bf16.msra.mxu1 %v1805_v51 }
 0x6b8   : > { %v1284_v20 = vpop.f32.mrf.mxu1 }
 0x6b9   : > { %v1290_v22 = vadd.f32 %v1284_v20, %v1952_v1  ;;  %v1796_v1 = vld [vmem:[%s2170_s13 + $0x8] sm:$0xff]  }
 0x6ba   : > { %v1742_v23 = vpop.f32.mrf.mxu1  ;;  %1745 = vmatpush3.bf16.msra.mxu0 %v1796_v1 }
 0x6bb   : > { %v2091_v24 = vadd.f32 %v1605_v21, %v1290_v22  ;;  %1746 = vmatprep.subr.bf16.mxu0 %v1838_v9 }
 0x6bc   : > { %v1287_v25 = vpop.f32.mrf.mxu1 }
 0x6bd   : > { %v1301_v26 = vsel %vm549_vm0, %v2091_v24, 0.0 }
 0x6be   : > { %1302 = vadd.xlane.f32.xlu1 %v1301_v26  ;;  %v1743_v27 = vpop.f32.mrf.mxu1  ;;  %1747 = vmatpush3.bf16.msra.mxu0 %v1797_v33 }
 0x747   : > { %v1303_v28 = vpop.xlane.xlu1 %1302 }
 0x748   : > { %v1304_v29 = vmul.f32 0.03125, %v1303_v28 }
 0x74a   : > { %v1305_v30 = vsub.f32 %v2091_v24, %v1304_v29 }
 0x74c   : > { %v1306_v31 = vmul.f32 %v1305_v30, %v1305_v30 }
 0x74e   : > { %v1307_v32 = vsel %vm549_vm0, %v1306_v31, 0.0 }
 0x74f   : > { %1308 = vadd.xlane.f32.xlu0 %v1307_v32 }
 0x7d8   : > { %v1309_v34 = vpop.xlane.xlu0 %1308 }
 0x7d9   : > { %v1310_v35 = vmul.f32 0.03125, %v1309_v34 }
 0x7db   : > { %v1311_v36 = vadd.f32 1e-05, %v1310_v35 }
 0x7dd   : > { %1824 = vrsqrt.f32 %v1311_v36 }
 0x7ea   : > { %v1825_v38 = vpop.eup %1824 }
 0x7eb   : > { %v1313_v40 = vmul.f32 %v1825_v38, %v1305_v30 }
 0x7ed   : > { %v1320_v42 = vmul.f32 %v1606_v39, %v1313_v40 }
 0x7ef   : > { %v1327_v43 = vadd.f32 %v1607_v41, %v1320_v42 }
 0x7f1   : > { %v1328_v44 = vpack.c.bf16 %v1327_v43, %v1327_v43 }
 0x7f3   : > { %1749 = vmatmul.mubr.msk.bf16.vlgmr.msra.gmra.mxu0 %vm549_vm0, %v1328_v44 }
 0x8b3   : > { %v1389_v53 = vpop.f32.mrf.mxu0 }
 0x8b4   : > { %v1390_v54 = vadd.f32 %v1608_v52, %v1389_v53 }
 0x8b5   : > { %v1750_v55 = vpop.f32.mrf.mxu0 }
 0x8b6   : > { %v1612_v56 = vmul.f32 -1.702, %v1390_v54 }
 0x8b7   : > { %v1392_v57 = vpop.f32.mrf.mxu0 }
 0x8b8   : > { %v1397_v58 = vmul.f32 1.442695, %v1612_v56 }
 0x8b9   : > { %v1751_v59 = vpop.f32.mrf.mxu0 }
 0x8ba   : > { %1826 = vpow2.f32 %v1397_v58 }
 0x8c7   : > { %v1827_v60 = vpop.eup %1826 }
 0x8c8   : > { %v1399_v9 = vadd.f32 1.0, %v1827_v60 }
 0x8ca   : > { %1828 = vrcp.f32 %v1399_v9 }
 0x8d7   : > { %v1829_v61 = vpop.eup %1828 }
 0x8d8   : > { %v1402_v62 = vmul.f32 %v1829_v61, %v1390_v54 }
 0x8da   : > { %v1403_v63 = vpack.c.bf16 %v1402_v62, %v1402_v62 }
 0x8dc   : > { %1769 = vmatmul.mubr.bf16.vlgmr.msra.gmra.mxu1 %v1403_v63 }
 0x99c   : > { %v1502_v0 = vpop.f32.mrf.mxu1 }
 0x99d   : > { %v1508_v3 = vadd.f32 %v1502_v0, %v2091_v24 }
 0x99e   : > { %v1770_v4 = vpop.f32.mrf.mxu1 }
 0x99f   : > { %v1516_v5 = vadd.f32 %v1621_v2, %v1508_v3 }
 0x9a0   : > { %v1505_v6 = vpop.f32.mrf.mxu1 }
 0x9a1   : > { %v1517_v7 = vpack.c.bf16 %v1516_v5, %v1516_v5 }
 0x9a2   : > { %v1771_v8 = vpop.f32.mrf.mxu1 }
 0x9a3   : > { %1519 = vst.msk [vmem:[%s543_s21] sm:$0xf] %vm1518_vm6, %v1517_v7 }
 0x9a4 PF: > { %s27_s24 = sadd.s32 1, %s1836_s24  }
 0x9a5   : > { %p24_p4 = scmp.ge.s32.totalorder %s27_s24, 4  }
 0x9a7   :  { %26 = sbr.rel (!%p24_p4) target bundleno = 3 (0x3), region = 118 }

</bundles_post_ra>
